<compile_context>
chip_gen: v7x
topology: tpu7x:2x2x1
jax: 0.10.0
libtpu: 0.0.40
codegen_flags: <defaults>
</compile_context>

<pallas_src>
import jax
import jax.numpy as jnp
from jax import lax
from jax.experimental import pallas as pl
from jax.experimental.pallas import tpu as pltpu

DIM = 128                    # "dim" of FCN (small stand-in for the default 512)
N_PATH = 7                   # path tokens -> 8 rows after the cls token
N_OMIC = 15                  # omic tokens -> 16 rows after the cls token
S_P = 1 + N_PATH             # 8
S_G = 1 + N_OMIC             # 16
SEQ = S_P + S_G              # 24 stacked rows (path block then omic block)

# ---- bf16 weight-slab column offsets (all multiples of 128) ----------------
QKV_OFF = 0                  # [wq_p*scale | wk_p | wv_p | wq_g*scale | wk_g | wv_g]
WO_OFF = 6 * DIM             # [wo_p | wo_g]
FW1_OFF = 8 * DIM            # [fw1[:D] | fw1[D:]]
FW2_OFF = 10 * DIM           # fw2
W_COLS = 11 * DIM

# ---- f32 vector-slab column offsets ----------------------------------------
BQKV_OFF = 0                 # (1, 6D) packed qkv biases (q-bias carries the scale)
BO_OFF = 6 * DIM             # (1, 2D)  [bo_p | bo_g]
FB1_OFF = 8 * DIM            # (1, D)
FB2_OFF = 9 * DIM            # (1, D)
CLSP_OFF = 10 * DIM          # (1, D)
CLSG_OFF = 11 * DIM          # (1, D)
VEC_COLS = 12 * DIM


def _vmem():
    return pl.BlockSpec(memory_space=pltpu.MemorySpace.VMEM)


# ---------------------------------------------------------------------------
# Fused FCN.forward kernel
# TODO(synk): TransLayer's definition (NystromAttention, 8 heads, dropout) is not
# included in the provided source; implemented as pre-norm single-head softmax
# self-attention with a residual connection (dropout omitted -> eval mode).
# ---------------------------------------------------------------------------
def fcn_kernel(w_ref, ln_ref, vec_ref, x_path_ref, x_omic_ref, o_ref, xseq_ref):
    D = DIM

    # Build [cls_p; x_path; cls_g; x_omic] with plain stores into VMEM scratch
    # (no sublane-concat dependency chain ahead of the LayerNorm).
    xseq_ref[0:1, :] = vec_ref[:, CLSP_OFF:CLSP_OFF + D]
    xseq_ref[1:S_P, :] = x_path_ref[...]
    xseq_ref[S_P:S_P + 1, :] = vec_ref[:, CLSG_OFF:CLSG_OFF + D]
    xseq_ref[S_P + 1:SEQ, :] = x_omic_ref[...]
    x = xseq_ref[...]                                                  # (24, D) f32

    # One pre-norm LayerNorm pass for both branches (gamma/beta pre-expanded per row).
    mu = jnp.mean(x, axis=-1, keepdims=True)
    var = jnp.mean((x - mu) ** 2, axis=-1, keepdims=True)
    xn = (x - mu) * lax.rsqrt(var + 1e-5)
    xn = xn * ln_ref[:, 0:D] + ln_ref[:, D:2 * D]                      # (24, D)

    # One packed QKV matmul for both branches: (24,128) x (128,768), bf16 on MXU.
    qkv = jnp.dot(xn.astype(jnp.bfloat16), w_ref[:, QKV_OFF:QKV_OFF + 6 * D],
                  preferred_element_type=jnp.float32)
    qkv = qkv + vec_ref[:, BQKV_OFF:BQKV_OFF + 6 * D]                  # (24, 6D)

    def cls_attention(q, k, v):
        # q: (1, D), k/v: (Sb, D). Attention scale is pre-folded into the Q weights.
        # Contract on the last dims (no explicit k.T / XLU transpose).
        s = lax.dot_general(q.astype(jnp.bfloat16), k.astype(jnp.bfloat16),
                            (((1,), (1,)), ((), ())),
                            preferred_element_type=jnp.float32)        # (1, Sb)
        m = jnp.max(s, axis=-1, keepdims=True)
        p = jnp.exp(s - m)
        p = p * pl.reciprocal(jnp.sum(p, axis=-1, keepdims=True), approx=True)
        return jnp.dot(p.astype(jnp.bfloat16), v.astype(jnp.bfloat16),
                       preferred_element_type=jnp.float32)             # (1, D)

    # cls-row attention per branch (only row 0 of each branch is consumed downstream).
    ctx_p = cls_attention(qkv[0:1, 0:D],
                          qkv[0:S_P, D:2 * D], qkv[0:S_P, 2 * D:3 * D])
    ctx_g = cls_attention(qkv[S_P:S_P + 1, 3 * D:4 * D],
                          qkv[S_P:SEQ, 4 * D:5 * D], qkv[S_P:SEQ, 5 * D:6 * D])

    # One output projection for both branches: (2,128) x (128,256); take the
    # block-diagonal pieces, add biases and the cls-token residuals.
    ctx = jnp.concatenate([ctx_p, ctx_g], axis=0).astype(jnp.bfloat16)  # (2, D)
    ao = jnp.dot(ctx, w_ref[:, WO_OFF:WO_OFF + 2 * D],
                 preferred_element_type=jnp.float32)                    # (2, 2D)
    h_p = xseq_ref[0:1, :] + ao[0:1, 0:D] + vec_ref[:, BO_OFF:BO_OFF + D]
    h_g = xseq_ref[S_P:S_P + 1, :] + ao[1:2, D:2 * D] + vec_ref[:, BO_OFF + D:BO_OFF + 2 * D]

    # fusion MLP: Linear(2D->D) -> ReLU -> Linear(D->D) -> ReLU.
    # Linear(2D->D) done as one (2,128)x(128,256) matmul + block-diagonal row-sum,
    # so fw1 lives in the same 128-row weight slab.
    hpg = jnp.concatenate([h_p, h_g], axis=0).astype(jnp.bfloat16)       # (2, D)
    z = jnp.dot(hpg, w_ref[:, FW1_OFF:FW1_OFF + 2 * D],
                preferred_element_type=jnp.float32)                      # (2, 2D)
    z = z[0:1, 0:D] + z[1:2, D:2 * D] + vec_ref[:, FB1_OFF:FB1_OFF + D]
    z = jnp.maximum(z, 0.0)
    z = jnp.dot(z.astype(jnp.bfloat16), w_ref[:, FW2_OFF:FW2_OFF + D],
                preferred_element_type=jnp.float32) + vec_ref[:, FB2_OFF:FB2_OFF + D]
    o_ref[...] = jnp.maximum(z, 0.0)                                     # (1, D)


_COST = pl.CostEstimate(flops=5_100_000, transcendentals=64, bytes_accessed=410_000)


@jax.jit
def fcn_forward(params, x_path, x_omic):
    h_fused = pl.pallas_call(
        fcn_kernel,
        out_shape=jax.ShapeDtypeStruct((1, DIM), jnp.float32),
        in_specs=[_vmem()] * 5,
        out_specs=_vmem(),
        scratch_shapes=[pltpu.VMEM((SEQ, DIM), jnp.float32)],
        cost_estimate=_COST,
    )(params["w"], params["ln"], params["vec"], x_path, x_omic)
    return h_fused, None


# ---------------------------------------------------------------------------
# Parameter init (deterministic, synthetic — mirrors shapes in FCN.__init__),
# packed into three slabs so the kernel issues only a handful of DMAs.
# ---------------------------------------------------------------------------
def init_fcn_params(key, dim):
    assert dim == DIM
    keys = jax.random.split(key, 8)
    scale = float(dim) ** -0.5

    def w(k, shape):
        return jax.random.normal(k, shape, jnp.float32) * 0.02

    def branch_qkv(k):
        kq, kk, kv = jax.random.split(k, 3)
        # 1/sqrt(D) attention scale folded into the Q columns.
        return jnp.concatenate([w(kq, (dim, dim)) * scale,
                                w(kk, (dim, dim)),
                                w(kv, (dim, dim))], axis=1)              # (D, 3D)

    fw1 = w(keys[4], (2 * dim, dim))
    w_slab = jnp.concatenate(
        [branch_qkv(keys[0]), branch_qkv(keys[1]),                       # QKV path|omic
         w(keys[2], (dim, dim)), w(keys[3], (dim, dim)),                  # wo_p | wo_g
         fw1[0:dim, :], fw1[dim:2 * dim, :],                              # fw1 split
         w(keys[5], (dim, dim))],                                         # fw2
        axis=1).astype(jnp.bfloat16)                                      # (D, 11D)
    assert w_slab.shape == (dim, W_COLS)

    # LayerNorm params pre-expanded to per-row (rows 0:8 path, rows 8:24 omic).
    ln_slab = jnp.concatenate([jnp.ones((SEQ, dim), jnp.float32),         # gamma
                               jnp.zeros((SEQ, dim), jnp.float32)],       # beta
                              axis=1)                                     # (24, 2D)

    vec_slab = jnp.concatenate(
        [jnp.zeros((1, 6 * dim), jnp.float32),                            # bqkv (q-bias carries scale)
         jnp.zeros((1, 2 * dim), jnp.float32),                            # bo_p | bo_g
         jnp.zeros((1, dim), jnp.float32),                                # fb1
         jnp.zeros((1, dim), jnp.float32),                                # fb2
         jax.random.uniform(keys[6], (1, dim), jnp.float32),              # cls_p (torch.rand)
         jax.random.uniform(keys[7], (1, dim), jnp.float32)],             # cls_g (torch.rand)
        axis=1)                                                           # (1, 12D)
    assert vec_slab.shape == (1, VEC_COLS)

    return {"w": w_slab, "ln": ln_slab, "vec": vec_slab}


if __name__ == "__main__":
    key = jax.random.PRNGKey(0)
    k_params, k_path, k_omic = jax.random.split(key, 3)

    params = init_fcn_params(k_params, DIM)
    x_path = jax.random.normal(k_path, (N_PATH, DIM), jnp.float32)
    x_omic = jax.random.normal(k_omic, (N_OMIC, DIM), jnp.float32)

    h_fused, _ = fcn_forward(params, x_path, x_omic)
    h_fused = jax.block_until_ready(h_fused)

    assert h_fused.shape == (1, DIM)
    assert bool(jnp.all(jnp.isfinite(h_fused)))
    print("KERNEL_OK")
</pallas_src>

<mosaic_0001>
module attributes {stable_mosaic.version = 11 : i64} {
  func.func @fcn_kernel(%arg0: memref<128x1408xbf16, #tpu.memory_space<vmem>>, %arg1: memref<24x256xf32, #tpu.memory_space<vmem>>, %arg2: memref<1x1536xf32, #tpu.memory_space<vmem>>, %arg3: memref<7x128xf32, #tpu.memory_space<vmem>>, %arg4: memref<15x128xf32, #tpu.memory_space<vmem>>, %arg5: memref<1x128xf32, #tpu.memory_space<vmem>>, %arg6: memref<24x128xf32, #tpu.memory_space<vmem>>) attributes {dimension_semantics = [], scalar_prefetch = 0 : i64, scratch_operands = 1 : i64, tpu.core_type = #tpu.core_type<tc>} {
    %c0 = arith.constant 0 : index
    %c1280 = arith.constant 1280 : index
    %0 = vector.load %arg2[%c0, %c1280] : memref<1x1536xf32, #tpu.memory_space<vmem>>, vector<1x128xf32>
    %c0_0 = arith.constant 0 : index
    %c0_1 = arith.constant 0 : index
    %1 = vector.load %arg6[%c0_0, %c0_1] : memref<24x128xf32, #tpu.memory_space<vmem>>, vector<1x128xf32>
    tpu.vector_store %arg6[%c0_0, %c0_1], %0 {strides = array<i32>} : memref<24x128xf32, #tpu.memory_space<vmem>>, vector<1x128xf32>,
    %c0_2 = arith.constant 0 : index
    %c0_3 = arith.constant 0 : index
    %2 = vector.load %arg3[%c0_2, %c0_3] : memref<7x128xf32, #tpu.memory_space<vmem>>, vector<7x128xf32>
    %c1 = arith.constant 1 : index
    %c0_4 = arith.constant 0 : index
    %3 = vector.load %arg6[%c1, %c0_4] : memref<24x128xf32, #tpu.memory_space<vmem>>, vector<7x128xf32>
    tpu.vector_store %arg6[%c1, %c0_4], %2 {strides = array<i32>} : memref<24x128xf32, #tpu.memory_space<vmem>>, vector<7x128xf32>,
    %c0_5 = arith.constant 0 : index
    %c1408 = arith.constant 1408 : index
    %4 = vector.load %arg2[%c0_5, %c1408] : memref<1x1536xf32, #tpu.memory_space<vmem>>, vector<1x128xf32>
    %c8 = arith.constant 8 : index
    %c0_6 = arith.constant 0 : index
    %5 = vector.load %arg6[%c8, %c0_6] : memref<24x128xf32, #tpu.memory_space<vmem>>, vector<1x128xf32>
    tpu.vector_store %arg6[%c8, %c0_6], %4 {strides = array<i32>} : memref<24x128xf32, #tpu.memory_space<vmem>>, vector<1x128xf32>,
    %c0_7 = arith.constant 0 : index
    %c0_8 = arith.constant 0 : index
    %6 = vector.load %arg4[%c0_7, %c0_8] : memref<15x128xf32, #tpu.memory_space<vmem>>, vector<15x128xf32>
    %c9 = arith.constant 9 : index
    %c0_9 = arith.constant 0 : index
    %7 = vector.load %arg6[%c9, %c0_9] : memref<24x128xf32, #tpu.memory_space<vmem>>, vector<15x128xf32>
    tpu.vector_store %arg6[%c9, %c0_9], %6 {strides = array<i32>} : memref<24x128xf32, #tpu.memory_space<vmem>>, vector<15x128xf32>,
    %c0_10 = arith.constant 0 : index
    %c0_11 = arith.constant 0 : index
    %8 = vector.load %arg6[%c0_10, %c0_11] : memref<24x128xf32, #tpu.memory_space<vmem>>, vector<24x128xf32>
    %cst = arith.constant dense<0.000000e+00> : vector<24xf32>
    %9 = vector.multi_reduction <add>, %8, %cst [1] : vector<24x128xf32> to vector<24xf32>
    %10 = vector.shape_cast %9 : vector<24xf32> to vector<24x1xf32>
    %cst_12 = arith.constant 1.280000e+02 : f32
    %11 = vector.broadcast %cst_12 : f32 to vector<24x1xf32>
    %12 = arith.divf %10, %11 : vector<24x1xf32>
    %13 = vector.broadcast %12 : vector<24x1xf32> to vector<24x128xf32>
    %14 = arith.subf %8, %13 : vector<24x128xf32>
    %15 = arith.mulf %14, %14 : vector<24x128xf32>
    %cst_13 = arith.constant dense<0.000000e+00> : vector<24xf32>
    %16 = vector.multi_reduction <add>, %15, %cst_13 [1] : vector<24x128xf32> to vector<24xf32>
    %17 = vector.shape_cast %16 : vector<24xf32> to vector<24x1xf32>
    %cst_14 = arith.constant 1.280000e+02 : f32
    %18 = vector.broadcast %cst_14 : f32 to vector<24x1xf32>
    %19 = arith.divf %17, %18 : vector<24x1xf32>
    %20 = vector.broadcast %12 : vector<24x1xf32> to vector<24x128xf32>
    %21 = arith.subf %8, %20 : vector<24x128xf32>
    %cst_15 = arith.constant 9.99999974E-6 : f32
    %22 = vector.broadcast %cst_15 : f32 to vector<24x1xf32>
    %23 = arith.addf %19, %22 : vector<24x1xf32>
    %24 = math.rsqrt %23 : vector<24x1xf32>
    %25 = vector.broadcast %24 : vector<24x1xf32> to vector<24x128xf32>
    %26 = arith.mulf %21, %25 : vector<24x128xf32>
    %c0_16 = arith.constant 0 : index
    %c0_17 = arith.constant 0 : index
    %27 = vector.load %arg1[%c0_16, %c0_17] : memref<24x256xf32, #tpu.memory_space<vmem>>, vector<24x128xf32>
    %28 = arith.mulf %26, %27 : vector<24x128xf32>
    %c0_18 = arith.constant 0 : index
    %c128 = arith.constant 128 : index
    %29 = vector.load %arg1[%c0_18, %c128] : memref<24x256xf32, #tpu.memory_space<vmem>>, vector<24x128xf32>
    %30 = arith.addf %28, %29 : vector<24x128xf32>
    %31 = arith.truncf %30 : vector<24x128xf32> to vector<24x128xbf16>
    %c0_19 = arith.constant 0 : index
    %c0_20 = arith.constant 0 : index
    %32 = vector.load %arg0[%c0_19, %c0_20] : memref<128x1408xbf16, #tpu.memory_space<vmem>>, vector<128x768xbf16>
    %cst_21 = arith.constant dense<0.000000e+00> : vector<24x768xf32>
    %33 = tpu.matmul %31, %32, %cst_21 {dimension_numbers = #tpu.dot_dimension_numbers<[1], [0], [0], [1], [0, 0, 1, 1], [], []>} : vector<24x128xbf16>, vector<128x768xbf16>, vector<24x768xf32> -> vector<24x768xf32>
    %c0_22 = arith.constant 0 : index
    %c0_23 = arith.constant 0 : index
    %34 = vector.load %arg2[%c0_22, %c0_23] : memref<1x1536xf32, #tpu.memory_space<vmem>>, vector<1x768xf32>
    %35 = vector.broadcast %34 : vector<1x768xf32> to vector<24x768xf32>
    %36 = arith.addf %33, %35 : vector<24x768xf32>
    %37 = vector.extract_strided_slice %36 {offsets = [0, 0], sizes = [1, 128], strides = [1, 1]} : vector<24x768xf32> to vector<1x128xf32>
    %38 = vector.extract_strided_slice %36 {offsets = [0, 128], sizes = [8, 128], strides = [1, 1]} : vector<24x768xf32> to vector<8x128xf32>
    %39 = vector.extract_strided_slice %36 {offsets = [0, 256], sizes = [8, 128], strides = [1, 1]} : vector<24x768xf32> to vector<8x128xf32>
    %40 = arith.truncf %37 : vector<1x128xf32> to vector<1x128xbf16>
    %41 = arith.truncf %38 : vector<8x128xf32> to vector<8x128xbf16>
    %cst_24 = arith.constant dense<0.000000e+00> : vector<1x8xf32>
    %42 = tpu.matmul %40, %41, %cst_24 {dimension_numbers = #tpu.dot_dimension_numbers<[1], [1], [0], [0], [0, 0, 1, 0], [], []>} : vector<1x128xbf16>, vector<8x128xbf16>, vector<1x8xf32> -> vector<1x8xf32>
    %cst_25 = arith.constant dense<0xFF800000> : vector<1xf32>
    %43 = vector.multi_reduction <maximumf>, %42, %cst_25 [1] : vector<1x8xf32> to vector<1xf32>
    %44 = vector.shape_cast %43 : vector<1xf32> to vector<1x1xf32>
    %45 = vector.broadcast %44 : vector<1x1xf32> to vector<1x8xf32>
    %46 = arith.subf %42, %45 : vector<1x8xf32>
    %47 = math.exp %46 : vector<1x8xf32>
    %cst_26 = arith.constant dense<0.000000e+00> : vector<1xf32>
    %48 = vector.multi_reduction <add>, %47, %cst_26 [1] : vector<1x8xf32> to vector<1xf32>
    %49 = vector.shape_cast %48 : vector<1xf32> to vector<1x1xf32>
    %50 = tpu.reciprocal %49 {approx = true} : vector<1x1xf32> -> vector<1x1xf32>
    %51 = vector.broadcast %50 : vector<1x1xf32> to vector<1x8xf32>
    %52 = arith.mulf %47, %51 : vector<1x8xf32>
    %53 = arith.truncf %52 : vector<1x8xf32> to vector<1x8xbf16>
    %54 = arith.truncf %39 : vector<8x128xf32> to vector<8x128xbf16>
    %cst_27 = arith.constant dense<0.000000e+00> : vector<1x128xf32>
    %55 = tpu.matmul %53, %54, %cst_27 {dimension_numbers = #tpu.dot_dimension_numbers<[1], [0], [0], [1], [0, 0, 1, 1], [], []>} : vector<1x8xbf16>, vector<8x128xbf16>, vector<1x128xf32> -> vector<1x128xf32>
    %56 = vector.extract_strided_slice %36 {offsets = [8, 384], sizes = [1, 128], strides = [1, 1]} : vector<24x768xf32> to vector<1x128xf32>
    %57 = vector.extract_strided_slice %36 {offsets = [8, 512], sizes = [16, 128], strides = [1, 1]} : vector<24x768xf32> to vector<16x128xf32>
    %58 = vector.extract_strided_slice %36 {offsets = [8, 640], sizes = [16, 128], strides = [1, 1]} : vector<24x768xf32> to vector<16x128xf32>
    %59 = arith.truncf %56 : vector<1x128xf32> to vector<1x128xbf16>
    %60 = arith.truncf %57 : vector<16x128xf32> to vector<16x128xbf16>
    %cst_28 = arith.constant dense<0.000000e+00> : vector<1x16xf32>
    %61 = tpu.matmul %59, %60, %cst_28 {dimension_numbers = #tpu.dot_dimension_numbers<[1], [1], [0], [0], [0, 0, 1, 0], [], []>} : vector<1x128xbf16>, vector<16x128xbf16>, vector<1x16xf32> -> vector<1x16xf32>
    %cst_29 = arith.constant dense<0xFF800000> : vector<1xf32>
    %62 = vector.multi_reduction <maximumf>, %61, %cst_29 [1] : vector<1x16xf32> to vector<1xf32>
    %63 = vector.shape_cast %62 : vector<1xf32> to vector<1x1xf32>
    %64 = vector.broadcast %63 : vector<1x1xf32> to vector<1x16xf32>
    %65 = arith.subf %61, %64 : vector<1x16xf32>
    %66 = math.exp %65 : vector<1x16xf32>
    %cst_30 = arith.constant dense<0.000000e+00> : vector<1xf32>
    %67 = vector.multi_reduction <add>, %66, %cst_30 [1] : vector<1x16xf32> to vector<1xf32>
    %68 = vector.shape_cast %67 : vector<1xf32> to vector<1x1xf32>
    %69 = tpu.reciprocal %68 {approx = true} : vector<1x1xf32> -> vector<1x1xf32>
    %70 = vector.broadcast %69 : vector<1x1xf32> to vector<1x16xf32>
    %71 = arith.mulf %66, %70 : vector<1x16xf32>
    %72 = arith.truncf %71 : vector<1x16xf32> to vector<1x16xbf16>
    %73 = arith.truncf %58 : vector<16x128xf32> to vector<16x128xbf16>
    %cst_31 = arith.constant dense<0.000000e+00> : vector<1x128xf32>
    %74 = tpu.matmul %72, %73, %cst_31 {dimension_numbers = #tpu.dot_dimension_numbers<[1], [0], [0], [1], [0, 0, 1, 1], [], []>} : vector<1x16xbf16>, vector<16x128xbf16>, vector<1x128xf32> -> vector<1x128xf32>
    %75 = tpu.concatenate %55, %74 in 0 : vector<1x128xf32>, vector<1x128xf32> -> vector<2x128xf32>
    %76 = arith.truncf %75 : vector<2x128xf32> to vector<2x128xbf16>
    %c0_32 = arith.constant 0 : index
    %c768 = arith.constant 768 : index
    %77 = vector.load %arg0[%c0_32, %c768] : memref<128x1408xbf16, #tpu.memory_space<vmem>>, vector<128x256xbf16>
    %cst_33 = arith.constant dense<0.000000e+00> : vector<2x256xf32>
    %78 = tpu.matmul %76, %77, %cst_33 {dimension_numbers = #tpu.dot_dimension_numbers<[1], [0], [0], [1], [0, 0, 1, 1], [], []>} : vector<2x128xbf16>, vector<128x256xbf16>, vector<2x256xf32> -> vector<2x256xf32>
    %c0_34 = arith.constant 0 : index
    %c0_35 = arith.constant 0 : index
    %79 = vector.load %arg6[%c0_34, %c0_35] : memref<24x128xf32, #tpu.memory_space<vmem>>, vector<1x128xf32>
    %80 = vector.extract_strided_slice %78 {offsets = [0, 0], sizes = [1, 128], strides = [1, 1]} : vector<2x256xf32> to vector<1x128xf32>
    %81 = arith.addf %79, %80 : vector<1x128xf32>
    %c0_36 = arith.constant 0 : index
    %c768_37 = arith.constant 768 : index
    %82 = vector.load %arg2[%c0_36, %c768_37] : memref<1x1536xf32, #tpu.memory_space<vmem>>, vector<1x128xf32>
    %83 = arith.addf %81, %82 : vector<1x128xf32>
    %c8_38 = arith.constant 8 : index
    %c0_39 = arith.constant 0 : index
    %84 = vector.load %arg6[%c8_38, %c0_39] : memref<24x128xf32, #tpu.memory_space<vmem>>, vector<1x128xf32>
    %85 = vector.extract_strided_slice %78 {offsets = [1, 128], sizes = [1, 128], strides = [1, 1]} : vector<2x256xf32> to vector<1x128xf32>
    %86 = arith.addf %84, %85 : vector<1x128xf32>
    %c0_40 = arith.constant 0 : index
    %c896 = arith.constant 896 : index
    %87 = vector.load %arg2[%c0_40, %c896] : memref<1x1536xf32, #tpu.memory_space<vmem>>, vector<1x128xf32>
    %88 = arith.addf %86, %87 : vector<1x128xf32>
    %89 = tpu.concatenate %83, %88 in 0 : vector<1x128xf32>, vector<1x128xf32> -> vector<2x128xf32>
    %90 = arith.truncf %89 : vector<2x128xf32> to vector<2x128xbf16>
    %c0_41 = arith.constant 0 : index
    %c1024 = arith.constant 1024 : index
    %91 = vector.load %arg0[%c0_41, %c1024] : memref<128x1408xbf16, #tpu.memory_space<vmem>>, vector<128x256xbf16>
    %cst_42 = arith.constant dense<0.000000e+00> : vector<2x256xf32>
    %92 = tpu.matmul %90, %91, %cst_42 {dimension_numbers = #tpu.dot_dimension_numbers<[1], [0], [0], [1], [0, 0, 1, 1], [], []>} : vector<2x128xbf16>, vector<128x256xbf16>, vector<2x256xf32> -> vector<2x256xf32>
    %93 = vector.extract_strided_slice %92 {offsets = [0, 0], sizes = [1, 128], strides = [1, 1]} : vector<2x256xf32> to vector<1x128xf32>
    %94 = vector.extract_strided_slice %92 {offsets = [1, 128], sizes = [1, 128], strides = [1, 1]} : vector<2x256xf32> to vector<1x128xf32>
    %95 = arith.addf %93, %94 : vector<1x128xf32>
    %c0_43 = arith.constant 0 : index
    %c1024_44 = arith.constant 1024 : index
    %96 = vector.load %arg2[%c0_43, %c1024_44] : memref<1x1536xf32, #tpu.memory_space<vmem>>, vector<1x128xf32>
    %97 = arith.addf %95, %96 : vector<1x128xf32>
    %cst_45 = arith.constant 0.000000e+00 : f32
    %98 = vector.broadcast %cst_45 : f32 to vector<1x128xf32>
    %99 = arith.maximumf %97, %98 : vector<1x128xf32>
    %100 = arith.truncf %99 : vector<1x128xf32> to vector<1x128xbf16>
    %c0_46 = arith.constant 0 : index
    %c1280_47 = arith.constant 1280 : index
    %101 = vector.load %arg0[%c0_46, %c1280_47] : memref<128x1408xbf16, #tpu.memory_space<vmem>>, vector<128x128xbf16>
    %cst_48 = arith.constant dense<0.000000e+00> : vector<1x128xf32>
    %102 = tpu.matmul %100, %101, %cst_48 {dimension_numbers = #tpu.dot_dimension_numbers<[1], [0], [0], [1], [0, 0, 1, 1], [], []>} : vector<1x128xbf16>, vector<128x128xbf16>, vector<1x128xf32> -> vector<1x128xf32>
    %c0_49 = arith.constant 0 : index
    %c1152 = arith.constant 1152 : index
    %103 = vector.load %arg2[%c0_49, %c1152] : memref<1x1536xf32, #tpu.memory_space<vmem>>, vector<1x128xf32>
    %104 = arith.addf %102, %103 : vector<1x128xf32>
    %cst_50 = arith.constant 0.000000e+00 : f32
    %105 = vector.broadcast %cst_50 : f32 to vector<1x128xf32>
    %106 = arith.maximumf %104, %105 : vector<1x128xf32>
    %c0_51 = arith.constant 0 : index
    %c0_52 = arith.constant 0 : index
    %107 = vector.load %arg5[%c0_51, %c0_52] : memref<1x128xf32, #tpu.memory_space<vmem>>, vector<1x128xf32>
    tpu.vector_store %arg5[%c0_51, %c0_52], %106 {strides = array<i32>} : memref<1x128xf32, #tpu.memory_space<vmem>>, vector<1x128xf32>,
    return
  }
}

</mosaic_0001>

<bundles_post_ra>
// kernel: fcn_forward.1
= control target key start
LH: loop header
LB: loop body
LE: loop exit
PB: predicated region body
PF: predicated region fallthrough
CT: control target
= control target key end

     0   :  { %10 = vsyncpa [#allocation4], 0  ;;  %s1839_s0 = inlined_call_operand.hbm [shape: bf16[128,1408], index: 0, kind: input, shape index: {}]   ;;  %s1840_s1 = inlined_call_operand.hbm [shape: f32[24,256], index: 1, kind: input, shape index: {}]   ;;  %s1841_s2 = inlined_call_operand.hbm [shape: f32[1,1536], index: 2, kind: input, shape index: {}]   ;;  %s1842_s3 = inlined_call_operand.vmem [shape: f32[7,128], index: 3, kind: input, shape index: {}]   ;;  %s1843_s4 = inlined_call_operand.hbm [shape: f32[15,128], index: 4, kind: input, shape index: {}]   ;;  %s1844_s5 = inlined_call_operand.hbm [shape: f32[1,128], index: 5, kind: output, shape index: {}]  }
   0x1   :  { %11 = vsyncpa [#allocation7], 0 }
   0x2   :  { %12 = vsyncpa [#allocation10], 0 }
   0x3   :  { %13 = vsyncpa [#allocation5], 0  ;;  %s1656_s18 = smov [#allocation6]   ;;  %s1538_s22 = scalar_lea.hbm %s1840_s1, 768 }
   0x4   :  { %s31_s19 = sshll.u32 %s1656_s18, 4  ;;  %p1539_p0 = scmp.ne.s32.totalorder %s1840_s1, %s1538_s22  ;;  %s32_s19 = int_to_ptr.vmem [resolvable:$true] %s31_s19 }
   0x5   :  { %p1542_p1 = scmp.lt.u32.totalorder %s1538_s22, %s1840_s1 }
   0x7   :  { %p1544_p2 = pnand %p1542_p1, %p1539_p0 }
   0x9   :  { %1547 = shalt.err (!%p1544_p2)
}
   0xa   :  { %s1548_s27 = scalar_lea.vmem %s32_s19, 768  ;;  %p1553_p4 = scmp.lt.s32.totalorder %s32_s19, %s32_s19 }
   0xb   :  { %p1549_p3 = scmp.ne.s32.totalorder %s32_s19, %s1548_s27  ;;  %p1554_p5 = scmp.lt.s32.totalorder %s1548_s27, %s1548_s27 }
   0xd   :  { %p1555_p6 = por %p1554_p5, %p1553_p4 }
   0xf   :  { %p1556_p7 = pnand %p1555_p6, %p1549_p3 }
  0x11   :  { %1559 = shalt.err (!%p1556_p7)
}
  0x12   :  { %s1657_s28 = smov 256   ;;  %s1658_s29 = smov 16  }
  0x13   :  { %37 = dma.hbm_to_vmem [thread:$0]  %s1840_s1, 768, %s32_s19, [#allocation7], %s1657_s28, %s1657_s28, %s1658_s29  }
  0x14   :  { %s1659_s7 = smov [#allocation3]   ;;  %s1560_s11 = scalar_lea.hbm %s1839_s0, 11264 }
  0x15   :  { %s19_s8 = sshll.u32 %s1659_s7, 4  ;;  %p1561_p8 = scmp.ne.s32.totalorder %s1839_s0, %s1560_s11  ;;  %s20_s8 = int_to_ptr.vmem [resolvable:$true] %s19_s8 }
  0x16   :  { %p1564_p9 = scmp.lt.u32.totalorder %s1560_s11, %s1839_s0 }
  0x18   :  { %p1566_p10 = pnand %p1564_p9, %p1561_p8 }
  0x1a   :  { %1569 = shalt.err (!%p1566_p10)
}
  0x1b   :  { %s1570_s16 = scalar_lea.vmem %s20_s8, 11264  ;;  %p1575_p12 = scmp.lt.s32.totalorder %s20_s8, %s20_s8 }
  0x1c   :  { %p1571_p11 = scmp.ne.s32.totalorder %s20_s8, %s1570_s16  ;;  %p1576_p13 = scmp.lt.s32.totalorder %s1570_s16, %s1570_s16 }
  0x1e   :  { %p1577_p0 = por %p1576_p13, %p1575_p12 }
  0x20   :  { %p1578_p1 = pnand %p1577_p0, %p1571_p11 }
  0x22   :  { %1581 = shalt.err (!%p1578_p1)
}
  0x23   :  { %s1660_s1 = smov 704   ;;  %s1661_s17 = smov 44  }
  0x24   :  { %25 = dma.hbm_to_vmem [thread:$0]  %s1839_s0, 11264, %s20_s8, [#allocation4], %s1660_s1, %s1660_s1, %s1661_s17  }
  0x25   :  { %s1662_s20 = smov [#allocation8]   ;;  %s1663_s22 = smov [#allocation9]  }
  0x26   :  { %s44_s21 = sshll.u32 %s1662_s20, 4  ;;  %s55_s23 = sshll.u32 %s1663_s22, 4  ;;  %s45_s21 = int_to_ptr.vmem [resolvable:$true] %s44_s21  ;;  %s1724_s23 = int_to_ptr.vmem [resolvable:$true] %s55_s23 }
  0x27   :  { %s1582_s26 = scalar_lea.hbm %s1841_s2, 192 }
  0x28   :  { %p1583_p2 = scmp.ne.s32.totalorder %s1841_s2, %s1582_s26  ;;  %p1586_p3 = scmp.lt.u32.totalorder %s1582_s26, %s1841_s2 }
  0x2a   :  { %p1588_p4 = pnand %p1586_p3, %p1583_p2 }
  0x2c   :  { %1591 = shalt.err (!%p1588_p4)
}
  0x2d   :  { %s1592_s0 = scalar_lea.vmem %s45_s21, 192  ;;  %p1597_p6 = scmp.lt.s32.totalorder %s45_s21, %s45_s21 }
  0x2e   :  { %p1593_p5 = scmp.ne.s32.totalorder %s45_s21, %s1592_s0  ;;  %p1598_p7 = scmp.lt.s32.totalorder %s1592_s0, %s1592_s0 }
  0x30   :  { %p1599_p8 = por %p1598_p7, %p1597_p6 }
  0x32   :  { %p1600_p9 = pnand %p1599_p8, %p1593_p5 }
  0x34   :  { %1603 = shalt.err (!%p1600_p9)
}
  0x35   :  { %47 = dma.hbm_to_vmem [thread:$0]  %s1841_s2, 192, %s45_s21, [#allocation7]  }
  0x36   :  { %s1604_s10 = scalar_lea.hbm %s1843_s4, 256 }
  0x37   :  { %p1605_p10 = scmp.ne.s32.totalorder %s1843_s4, %s1604_s10  ;;  %p1608_p11 = scmp.lt.u32.totalorder %s1604_s10, %s1843_s4 }
  0x39   :  { %p1610_p12 = pnand %p1608_p11, %p1605_p10 }
  0x3b   :  { %1613 = shalt.err (!%p1610_p12)
}
  0x3c   :  { %s1614_s15 = scalar_lea.vmem %s1724_s23, 256  ;;  %p1619_p0 = scmp.lt.s32.totalorder %s1724_s23, %s1724_s23 }
  0x3d   :  { %p1615_p13 = scmp.ne.s32.totalorder %s1724_s23, %s1614_s15  ;;  %p1620_p1 = scmp.lt.s32.totalorder %s1614_s15, %s1614_s15 }
  0x3f   :  { %p1621_p2 = por %p1620_p1, %p1619_p0 }
  0x41   :  { %p1622_p3 = pnand %p1621_p2, %p1615_p13 }
  0x43   :  { %1625 = shalt.err (!%p1622_p3)
}
  0x44   :  { %s1664_s2 = smov 128   ;;  %s1665_s16 = smov 8  }
  0x45   :  { %61 = dma.hbm_to_vmem [thread:$0]  %s1843_s4, 256, %s1724_s23, [#allocation10], %s1664_s2, %s1664_s2, %s1665_s16  }
  0x46   :  { %1648 = dma.done.wait [#allocation4], 11264  }
  0x47   :  { %1649 = vsyncadd [#allocation4], 4294956032 }
  0x48   :  { %1650 = dma.done.wait [#allocation7], 960  }
  0x49   :  { %1651 = vsyncadd [#allocation7], 4294966336 }
  0x4a   :  { %1652 = dma.done.wait [#allocation10], 256  }
  0x4b   :  { %1653 = vsyncadd [#allocation10], 4294967040  ;;  %v75_v0 = vld [vmem:[#allocation8 + $0xa] sm:$0x1]  ;;  %v77_v1 = vld [vmem:[%s1842_s3] sm:$0x7f] }
  0x4c   :  { %v79_v2 = vld [vmem:[#allocation8 + $0xb] sm:$0x1]  ;;  %76 = vst [vmem:[#allocation2] sm:$0x1] %v75_v0  ;;  %78 = vst [vmem:[#allocation2 + $0x1] sm:$0x7f] %v77_v1 }
  0x4d   :  { %80 = vst [vmem:[#allocation2 + $0x8] sm:$0x1] %v79_v2  ;;  %v81_v3 = vld [vmem:[#allocation9] sm:$0xff]  ;;  %v82_v4 = vld [vmem:[#allocation9 + $0x8] sm:$0x7f]  ;;  %v1666_v46 = vmov 0  }
  0x4e   :  { %83 = vst [vmem:[#allocation2 + $0x9] sm:$0xff] %v81_v3  ;;  %84 = vst [vmem:[#allocation2 + $0x11] sm:$0x7f] %v82_v4  ;;  %v1396_v8 = vld [vmem:[#allocation3 + $0x4] ss:$44 sps:$4 sm:$0xff]   ;;  %488 = vmatprep.mubr.bf16.mxu0 %v1666_v46  ;;  %535 = vmatprep.mubr.bf16.mxu1 %v1666_v46  ;;  %vm1668_vm0 = vmmov 0  }
  0x4f   :  { %v1398_v9 = vld [vmem:[#allocation3] ss:$44 sps:$4 sm:$0xff]   ;;  %v1401_v11 = vld [vmem:[#allocation3 + $0x8] ss:$44 sps:$4 sm:$0xff]   ;;  %456 = vmatprep.subr.bf16.mxu0 %v1396_v8  ;;  %v1405_v13 = vld [vmem:[#allocation3 + $0x64] ss:$44 sps:$4 sm:$0xff]  }
  0x50   :  { %v1399_v10 = vld [vmem:[#allocation3 + $0xc] ss:$44 sps:$4 sm:$0xff]   ;;  %v1402_v12 = vld [vmem:[#allocation3 + $0x5c] ss:$44 sps:$4 sm:$0xff]   ;;  %457 = vmatpush1.bf16.msra.mxu0 %v1398_v9  ;;  %v1408_v28 = vld [vmem:[#allocation3 + $0xb4] ss:$44 sps:$4 sm:$0xff]  }
  0x51   :  { %503 = vmatprep.subr.bf16.mxu1 %v1399_v10  ;;  %v1404_v14 = vld [vmem:[#allocation3 + $0x58] ss:$44 sps:$4 sm:$0xff]   ;;  %458 = vmatprep.subr.bf16.mxu0 %v1402_v12  ;;  %v1407_v27 = vld [vmem:[#allocation3 + $0x60] ss:$44 sps:$4 sm:$0xff]   ;;  %v1410_v29 = vld [vmem:[#allocation3 + $0xb0] ss:$44 sps:$4 sm:$0xff]  }
  0x52   :  { %504 = vmatpush1.bf16.msra.mxu1 %v1401_v11  ;;  %v1411_v30 = vld [vmem:[#allocation3 + $0xbc] ss:$44 sps:$4 sm:$0xff]   ;;  %v1413_v31 = vld [vmem:[#allocation3 + $0xb8] ss:$44 sps:$4 sm:$0xff]   ;;  %v1417_v34 = vld [vmem:[#allocation3 + $0x114] ss:$44 sps:$4 sm:$0xff]  }
  0x53   :  { %v85_v5 = vld [vmem:[#allocation2] sm:$0xff]  ;;  %505 = vmatprep.subr.bf16.mxu1 %v1405_v13  ;;  %v1419_v35 = vld [vmem:[#allocation3 + $0x110] ss:$44 sps:$4 sm:$0xff]   ;;  %v1428_v42 = vld [vmem:[#allocation3 + $0x1b8] ss:$44 sps:$4 sm:$0xff]   ;;  %vm659_vm1 = vcmask 1043456  }
  0x54   :  { %88 = vadd.xlane.f32.xlu0 %v85_v5  ;;  %459 = vmatpush1.bf16.msra.mxu0 %v1404_v14  ;;  %v1414_v32 = vld [vmem:[#allocation3 + $0x10c] ss:$44 sps:$4 sm:$0xff]   ;;  %v1416_v33 = vld [vmem:[#allocation3 + $0x108] ss:$44 sps:$4 sm:$0xff]   ;;  %v1420_v36 = vld [vmem:[#allocation3 + $0x164] ss:$44 sps:$4 sm:$0xff]  }
  0x55   :  { %v86_v6 = vld [vmem:[#allocation2 + $0x8] sm:$0xff]  ;;  %v87_v7 = vld [vmem:[#allocation2 + $0x10] sm:$0xff]  ;;  %460 = vmatprep.subr.bf16.mxu0 %v1408_v28  ;;  %v1422_v37 = vld [vmem:[#allocation3 + $0x160] ss:$44 sps:$4 sm:$0xff]   ;;  %vm641_vm2 = vcmask 57344   ;;  %vm655_vm3 = vcmask 64512  }
  0x56   :  { %506 = vmatpush1.bf16.msra.mxu1 %v1407_v27  ;;  %v1423_v38 = vld [vmem:[#allocation3 + $0x16c] ss:$44 sps:$4 sm:$0xff]   ;;  %v1425_v39 = vld [vmem:[#allocation3 + $0x168] ss:$44 sps:$4 sm:$0xff]   ;;  %v1429_v41 = vld [vmem:[#allocation3 + $0x1c4] ss:$44 sps:$4 sm:$0xff]  }
  0x57   :  { %507 = vmatprep.subr.bf16.mxu1 %v1411_v30  ;;  %v1426_v40 = vld [vmem:[#allocation3 + $0x1bc] ss:$44 sps:$4 sm:$0xff]   ;;  %v1431_v43 = vld [vmem:[#allocation3 + $0x1c0] ss:$44 sps:$4 sm:$0xff]   ;;  %v1437_v48 = vld [vmem:[#allocation3 + $0x218] ss:$44 sps:$4 sm:$0xff]  }
  0x58   :  { %90 = vadd.xlane.f32.xlu0 %v86_v6  ;;  %461 = vmatpush1.bf16.msra.mxu0 %v1410_v29  ;;  %v1432_v44 = vld [vmem:[#allocation3 + $0x214] ss:$44 sps:$4 sm:$0xff]   ;;  %v1435_v45 = vld [vmem:[#allocation3 + $0x21c] ss:$44 sps:$4 sm:$0xff]   ;;  %v1438_v49 = vld [vmem:[#allocation3 + $0x26c] ss:$44 sps:$4 sm:$0xff]  }
  0x59   :  { %462 = vmatprep.subr.bf16.mxu0 %v1414_v32  ;;  %v1434_v47 = vld [vmem:[#allocation3 + $0x210] ss:$44 sps:$4 sm:$0xff]   ;;  %v1441_v50 = vld [vmem:[#allocation3 + $0x274] ss:$44 sps:$4 sm:$0xff]   ;;  %v1461_v28 = vld [vmem:[#allocation3 + $0x1cc] ss:$44 sps:$4 sm:$0xff]  }
  0x5a   :  { %508 = vmatpush1.bf16.msra.mxu1 %v1413_v31  ;;  %v1440_v51 = vld [vmem:[#allocation3 + $0x268] ss:$44 sps:$4 sm:$0xff]   ;;  %v1443_v52 = vld [vmem:[#allocation3 + $0x270] ss:$44 sps:$4 sm:$0xff]   ;;  %v122_v1 = vld [vmem:[#allocation6] sm:$0xff]  ;;  %vm745_vm4 = vcmask 122880  }
  0x5b   :  { %509 = vmatprep.subr.bf16.mxu1 %v1417_v34  ;;  %v1446_v53 = vld [vmem:[#allocation3 + $0x14] ss:$44 sps:$4 sm:$0xff]   ;;  %v1444_v14 = vld [vmem:[#allocation3 + $0x10] ss:$44 sps:$4 sm:$0xff]   ;;  %v1667_v34 = vmov 0.0   ;;  %vm759_vm5 = vcmask 130048  }
  0x5c   :  { %92 = vadd.xlane.f32.xlu0 %v87_v7  ;;  %463 = vmatpush1.bf16.msra.mxu0 %v1416_v33  ;;  %v123_v3 = vld [vmem:[#allocation6 + $0x10] sm:$0xff]  ;;  %v124_v10 = vld [vmem:[#allocation6 + $0x20] sm:$0xff]  ;;  %v1467_v32 = vld [vmem:[#allocation3 + $0x27c] ss:$44 sps:$4 sm:$0xff]   ;;  %vm806_vm6 = vcmask 1040384   ;;  %s1669_s3 = smov [#allocation11]  }
  0x5d   :  { %464 = vmatprep.subr.bf16.mxu0 %v1420_v36  ;;  %v1456_v27 = vld [vmem:[#allocation3 + $0x170] ss:$44 sps:$4 sm:$0xff]   ;;  %v1459_v29 = vld [vmem:[#allocation3 + $0x1c8] ss:$44 sps:$4 sm:$0xff]   ;;  %v1462_v31 = vld [vmem:[#allocation3 + $0x220] ss:$44 sps:$4 sm:$0xff]  }
  0x5e   :  { %510 = vmatpush1.bf16.msra.mxu1 %v1419_v35  ;;  %v1464_v30 = vld [vmem:[#allocation3 + $0x224] ss:$44 sps:$4 sm:$0xff]   ;;  %v186_v35 = vlaneseq  ;;  %s1220_s4 = sshll.u32 %s1669_s3, 4  ;;  %s1221_s4 = int_to_ptr.vmem [resolvable:$true] %s1220_s4 }
  0x5f   :  { %511 = vmatprep.subr.bf16.mxu1 %v1423_v38  ;;  %v1465_v33 = vld [vmem:[#allocation3 + $0x278] ss:$44 sps:$4 sm:$0xff]   ;;  %v1786_v38 = vld [vmem:[#allocation8] sm:$0x3f]  ;;  %s1626_s20 = scalar_lea.vmem %s1221_s4, 16  ;;  %s1630_s21 = scalar_lea.vmem %s1221_s4, 32 }
  0x60   :  { %465 = vmatpush1.bf16.msra.mxu0 %v1422_v37  ;;  %v1783_v36 = vshrl.u32 %v186_v35, 7  ;;  %p1627_p4 = scmp.ne.s32.totalorder %s1221_s4, %s1626_s20  ;;  %p1631_p5 = scmp.lt.s32.totalorder %s1221_s4, %s1221_s4 }
  0x61   :  { %466 = vmatprep.subr.bf16.mxu0 %v1426_v40  ;;  %p1632_p6 = scmp.lt.s32.totalorder %s1630_s21, %s1626_s20 }
  0x62   :  { %512 = vmatpush1.bf16.msra.mxu1 %v1425_v39  ;;  %v192_v37 = vsub.s32 1, %v1783_v36  ;;  %v196_v39 = vsub.s32 2, %v1783_v36 }
  0x63   :  { %513 = vmatprep.subr.bf16.mxu1 %v1429_v41  ;;  %v188_v41 = vsub.s32 0, %v1783_v36  ;;  %p1633_p7 = por %p1632_p6, %p1631_p5 }
  0x64   :  { %467 = vmatpush1.bf16.msra.mxu0 %v1428_v42  ;;  %v193_v40 = vrot.slane %v1786_v38, %v192_v37 }
  0x65   :  { %468 = vmatprep.subr.bf16.mxu0 %v1432_v44  ;;  %v197_v44 = vrot.slane %v1786_v38, %v196_v39  ;;  %p1634_p8 = pnand %p1633_p7, %p1627_p4 }
  0x66   :  { %514 = vmatpush1.bf16.msra.mxu1 %v1431_v43 }
  0x67   :  { %515 = vmatprep.subr.bf16.mxu1 %v1435_v45 }
  0x68   :  { %469 = vmatpush1.bf16.msra.mxu0 %v1434_v47 }
  0x69   :  { %470 = vmatprep.subr.bf16.mxu0 %v1438_v49 }
  0x6a   :  { %516 = vmatpush1.bf16.msra.mxu1 %v1437_v48 }
  0x6b   :  { %517 = vmatprep.subr.bf16.mxu1 %v1441_v50 }
  0x6c   :  { %471 = vmatpush1.bf16.msra.mxu0 %v1440_v51  ;;  %v189_v51 = vrot.slane %v1786_v38, %v188_v41 }
  0x6d   :  { %550 = vmatprep.subr.bf16.mxu0 %v1446_v53 }
  0x6e   :  { %518 = vmatpush1.bf16.msra.mxu1 %v1443_v52 }
  0x6f   :  { %1338 = vmatprep.subr.bf16.mxu1 %v1667_v34 }
  0xe1   :  { %v89_v15 = vpop.xlane.xlu0 %88 }
  0xe2   :  { %v95_v16 = vmul.f32 0.0078125, %v89_v15  ;;  %v130_v15 = vld [vmem:[#allocation6 + $0x28] sm:$0xff] }
  0xe4   :  { %v1758_v17 = vsub.f32 %v85_v5, %v95_v16 }
  0xe5   :  { %v91_v18 = vpop.xlane.xlu0 %90 }
  0xe6   :  { %v96_v19 = vmul.f32 0.0078125, %v91_v18  ;;  %v101_v20 = vmul.f32 %v1758_v17, %v1758_v17  ;;  %v1449_v18 = vld [vmem:[#allocation3 + $0x6c] ss:$44 sps:$4 sm:$0xff]  }
  0xe8   :  { %v1762_v21 = vsub.f32 %v86_v6, %v96_v19  ;;  %104 = vadd.xlane.f32.xlu1 %v101_v20  ;;  %v128_v6 = vld [vmem:[#allocation6 + $0x8] sm:$0xff] }
  0xe9   :  { %v93_v22 = vpop.xlane.xlu0 %92  ;;  %v1447_v20 = vld [vmem:[#allocation3 + $0x68] ss:$44 sps:$4 sm:$0xff]  }
  0xea   :  { %v102_v23 = vmul.f32 %v1762_v21, %v1762_v21  ;;  %v97_v24 = vmul.f32 0.0078125, %v93_v22 }
  0xec   :  { %106 = vadd.xlane.f32.xlu1 %v102_v23  ;;  %v1766_v25 = vsub.f32 %v87_v7, %v97_v24  ;;  %v129_v7 = vld [vmem:[#allocation6 + $0x18] sm:$0xff]  ;;  %v1450_v23 = vld [vmem:[#allocation3 + $0xc0] ss:$44 sps:$4 sm:$0xff]  }
  0xed   :  { %v1455_v24 = vld [vmem:[#allocation3 + $0x11c] ss:$44 sps:$4 sm:$0xff]  }
  0xee   :  { %v103_v26 = vmul.f32 %v1766_v25, %v1766_v25 }
  0xf0   :  { %108 = vadd.xlane.f32.xlu1 %v103_v26  ;;  %v1458_v26 = vld [vmem:[#allocation3 + $0x174] ss:$44 sps:$4 sm:$0xff]  }
 0x175   :  { %v105_v54 = vpop.xlane.xlu1 %104 }
 0x176   :  { %v110_v55 = vmul.f32 0.0078125, %v105_v54 }
 0x178   :  { %v113_v56 = vadd.f32 1e-05, %v110_v55 }
 0x179   :  { %v107_v57 = vpop.xlane.xlu1 %106 }
 0x17a   :  { %1524 = vrsqrt.f32 %v113_v56  ;;  %v111_v58 = vmul.f32 0.0078125, %v107_v57 }
 0x17c   :  { %v114_v59 = vadd.f32 1e-05, %v111_v58 }
 0x17d   :  { %v109_v60 = vpop.xlane.xlu1 %108 }
 0x17e   :  { %1526 = vrsqrt.f32 %v114_v59  ;;  %v112_v61 = vmul.f32 0.0078125, %v109_v60 }
 0x180   :  { %v115_v62 = vadd.f32 1e-05, %v112_v61 }
 0x182   :  { %1528 = vrsqrt.f32 %v115_v62 }
 0x184   :  { %v1525_v63 = vpop.eup %1524 }
 0x185   :  { %v119_v0 = vmul.f32 %v1525_v63, %v1758_v17 }
 0x187   :  { %v125_v5 = vmul.f32 %v122_v1, %v119_v0 }
 0x188   :  { %v1527_v2 = vpop.eup %1526 }
 0x189   :  { %v120_v4 = vmul.f32 %v1527_v2, %v1762_v21  ;;  %v131_v11 = vadd.f32 %v128_v6, %v125_v5  ;;  %v1452_v21 = vld [vmem:[#allocation3 + $0xc4] ss:$44 sps:$4 sm:$0xff]   ;;  %v204_v6 = vsub.s32 4, %v1783_v36 }
 0x18b   :  { %v126_v8 = vmul.f32 %v123_v3, %v120_v4 }
 0x18c   :  { %v1529_v9 = vpop.eup %1528 }
 0x18d   :  { %v132_v12 = vadd.f32 %v129_v7, %v126_v8  ;;  %v121_v13 = vmul.f32 %v1529_v9, %v1766_v25  ;;  %v1453_v25 = vld [vmem:[#allocation3 + $0x118] ss:$44 sps:$4 sm:$0xff]   ;;  %v208_v8 = vsub.s32 5, %v1783_v36 }
 0x18f   :  { %v134_v16 = vpack.c.bf16 %v132_v12, %v131_v11  ;;  %v127_v17 = vmul.f32 %v124_v10, %v121_v13  ;;  %v205_v10 = vrot.slane %v1786_v38, %v204_v6  ;;  %v209_v11 = vrot.slane %v1786_v38, %v208_v8 }
 0x191   :  { %489 = vmatmul.mubr.bf16.vlgmr.msra.gmra.mrb[0].mxu0 %v134_v16  ;;  %536 = vmatmul.mubr.bf16.vlgmr.msra.gmra.mrb[0].mxu1 %v134_v16  ;;  %v133_v19 = vadd.f32 %v130_v15, %v127_v17 }
 0x192   :  { %551 = vmatpush1.bf16.msra.mxu0 %v1444_v14  ;;  %496 = vmatprep.mubr.bf16.mxu0 %v1666_v46 }
 0x193   :  { %552 = vmatprep.subr.bf16.mxu0 %v1449_v18  ;;  %543 = vmatprep.mubr.bf16.mxu1 %v1666_v46  ;;  %v135_v22 = vpack.c.bf16 %v133_v19, %v133_v19 }
 0x196   :  { %553 = vmatpush1.bf16.msra.mxu0 %v1447_v20 }
 0x197   :  { %554 = vmatprep.subr.bf16.mxu0 %v1452_v21 }
 0x199   :  { %497 = vmatmul.mubr.bf16.gmra.mrb[4].mxu0 %v135_v22  ;;  %544 = vmatmul.mubr.bf16.gmra.mrb[4].mxu1 %v135_v22 }
 0x19a   :  { %555 = vmatpush1.bf16.msra.mxu0 %v1450_v23  ;;  %582 = vmatprep.mubr.bf16.mxu0 %v1666_v46 }
 0x19b   :  { %556 = vmatprep.subr.bf16.mxu0 %v1455_v24  ;;  %1340 = vmatprep.mubr.msk.bf16.mxu1 %vm1668_vm0, %v1667_v34 }
 0x19e   :  { %557 = vmatpush1.bf16.msra.mxu0 %v1453_v25 }
 0x19f   :  { %558 = vmatprep.subr.bf16.mxu0 %v1458_v26 }
 0x1a2   :  { %559 = vmatpush1.bf16.msra.mxu0 %v1456_v27 }
 0x1a3   :  { %560 = vmatprep.subr.bf16.mxu0 %v1461_v28 }
 0x1a6   :  { %561 = vmatpush1.bf16.msra.mxu0 %v1459_v29 }
 0x1a7   :  { %562 = vmatprep.subr.bf16.mxu0 %v1464_v30 }
 0x1aa   :  { %563 = vmatpush1.bf16.msra.mxu0 %v1462_v31 }
 0x1ab   :  { %564 = vmatprep.subr.bf16.mxu0 %v1467_v32 }
 0x1ae   :  { %565 = vmatpush1.bf16.msra.mxu0 %v1465_v33  ;;  %v200_v33 = vsub.s32 3, %v1783_v36 }
 0x1b0   :  { %v201_v39 = vrot.slane %v1786_v38, %v200_v33  ;;  %v1515_v33 = vld [vmem:[#allocation3 + $0x28c] ss:$44 sps:$4 sm:$0xff]  }
 0x1b1   :  { %583 = vmatmul.mubr.bf16.vlgmr.msra.gmra.mrb[8].mxu0 %v134_v16 }
 0x1b2   :  { %590 = vmatprep.mubr.bf16.mxu0 %v1666_v46 }
 0x1b9   :  { %591 = vmatmul.mubr.bf16.gmra.mrb[12].mxu0 %v135_v22 }
 0x1ba   :  { %937 = vmatprep.mubr.bf16.mxu0 %v1666_v46 }
 0x264   :  { %v490_v42 = vpop.f32.mrb[0].mxu0  ;;  %v537_v43 = vpop.f32.mrb[0].mxu1 }
 0x265   :  { %v492_v45 = vpop.f32.mrb[1].mxu0  ;;  %v539_v47 = vpop.f32.mrb[1].mxu1  ;;  %v538_v55 = vadd.f32 %v537_v43, %v197_v44  ;;  %v491_v56 = vadd.f32 %v490_v42, %v189_v51 }
 0x266   :  { %v493_v48 = vadd.f32 %v492_v45, %v193_v40  ;;  %v494_v49 = vpop.f32.mrb[2].mxu0  ;;  %v540_v50 = vpop.f32.mrb[2].mxu1 }
 0x267   :  { %v495_v52 = vpop.f32.mrb[3].mxu0  ;;  %v1793_v53 = vpop.f32.mrb[3].mxu1  ;;  %v654_v59 = vpack.c.bf16 %v538_v55, %v538_v55  ;;  %v599_v0 = vpack.c.bf16 %v491_v56, %v491_v56  ;;  %v1468_v56 = vld [vmem:[#allocation3 + $0x18] ss:$44 sps:$4 sm:$0xff]  }
 0x268   :  { %v600_v54 = vpack.c.bf16 %v493_v48, %v493_v48  ;;  %v542_v41 = vadd.f32 %v1793_v53, %v201_v39  ;;  %v1518_v39 = vld [vmem:[#allocation3 + $0xd8] ss:$44 sps:$4 sm:$0xff]  }
 0x269   :  { %v661_v3 = vsel %vm659_vm1, %v654_v59, 0  ;;  %v1471_v59 = vld [vmem:[#allocation3 + $0x70] ss:$44 sps:$4 sm:$0xff]  }
 0x26a   :  { %1339 = vmatpush3.bf16.xpose.msra.mxu1 %v600_v54  ;;  %v703_v42 = vpack.c.bf16 %v542_v41, %v542_v41  ;;  %v1520_v41 = vld [vmem:[#allocation3 + $0x188] ss:$44 sps:$4 sm:$0xff]  }
 0x26b   :  { %1344 = vmatprep.subr.bf16.mxu1 %v1667_v34 }
 0x26c   :  { %v498_v57 = vpop.f32.mrb[4].mxu0  ;;  %v545_v58 = vpop.f32.mrb[4].mxu1 }
 0x26d   :  { %v499_v60 = vpop.f32.mrb[5].mxu0  ;;  %v546_v61 = vpop.f32.mrb[5].mxu1  ;;  %v1470_v57 = vld [vmem:[#allocation3 + $0x1c] ss:$44 sps:$4 sm:$0xff]   ;;  %v1473_v58 = vld [vmem:[#allocation3 + $0x74] ss:$44 sps:$4 sm:$0xff]  }
 0x26e   :  { %v500_v62 = vpop.f32.mrb[6].mxu0  ;;  %v547_v63 = vpop.f32.mrb[6].mxu1  ;;  %905 = vmatprep.subr.bf16.mxu0 %v1470_v57  ;;  %v1476_v60 = vld [vmem:[#allocation3 + $0xcc] ss:$44 sps:$4 sm:$0xff]   ;;  %v1474_v61 = vld [vmem:[#allocation3 + $0xc8] ss:$44 sps:$4 sm:$0xff]  }
 0x26f   :  { %v501_v1 = vpop.f32.mrb[7].mxu0  ;;  %v548_v2 = vpop.f32.mrb[7].mxu1  ;;  %906 = vmatpush1.bf16.msra.mxu0 %v1468_v56  ;;  %v1479_v62 = vld [vmem:[#allocation3 + $0x124] ss:$44 sps:$4 sm:$0xff]   ;;  %v1477_v63 = vld [vmem:[#allocation3 + $0x120] ss:$44 sps:$4 sm:$0xff]  }
 0x270   :  { %907 = vmatprep.subr.bf16.mxu0 %v1473_v58  ;;  %v1480_v1 = vld [vmem:[#allocation3 + $0x178] ss:$44 sps:$4 sm:$0xff]   ;;  %v1485_v2 = vld [vmem:[#allocation3 + $0x1d4] ss:$44 sps:$4 sm:$0xff]  }
 0x271   :  { %1341 = vmatmul.mubr.bf16.vlgmr.msra.gmra.mrb[8].mxu1 %v599_v0  ;;  %v1482_v0 = vld [vmem:[#allocation3 + $0x17c] ss:$44 sps:$4 sm:$0xff]   ;;  %v1521_v57 = vld [vmem:[#allocation3 + $0x1e0] ss:$44 sps:$4 sm:$0xff]   ;;  %v1522_v58 = vld [vmem:[#allocation3 + $0x238] ss:$44 sps:$4 sm:$0xff]  }
 0x272   :  { %1345 = vmatpush3.bf16.msra.mxu1 %v661_v3  ;;  %1346 = vmatprep.mubr.msk.bf16.mxu1 %vm1668_vm0, %v1667_v34  ;;  %v1483_v3 = vld [vmem:[#allocation3 + $0x1d0] ss:$44 sps:$4 sm:$0xff]  }
 0x273   :  { %1350 = vmatprep.subr.bf16.mxu1 %v1667_v34  ;;  %908 = vmatpush1.bf16.msra.mxu0 %v1471_v59  ;;  %v1523_v59 = vld [vmem:[#allocation3 + $0x290] ss:$44 sps:$4 sm:$0xff]  }
 0x274   :  { %909 = vmatprep.subr.bf16.mxu0 %v1476_v60 }
 0x277   :  { %910 = vmatpush1.bf16.msra.mxu0 %v1474_v61 }
 0x278   :  { %911 = vmatprep.subr.bf16.mxu0 %v1479_v62 }
 0x27b   :  { %912 = vmatpush1.bf16.msra.mxu0 %v1477_v63 }
 0x27c   :  { %913 = vmatprep.subr.bf16.mxu0 %v1482_v0  ;;  %v1103_v0 = vld [vmem:[#allocation8 + $0x8] sm:$0x1] }
 0x27f   :  { %914 = vmatpush1.bf16.msra.mxu0 %v1480_v1 }
 0x280   :  { %915 = vmatprep.subr.bf16.mxu0 %v1485_v2 }
 0x283   :  { %916 = vmatpush1.bf16.msra.mxu0 %v1483_v3 }
 0x284   :  { %v584_v4 = vpop.f32.mrb[8].mxu0 }
 0x285   :  { %v585_v5 = vpop.f32.mrb[9].mxu0  ;;  %v1488_v4 = vld [vmem:[#allocation3 + $0x22c] ss:$44 sps:$4 sm:$0xff]  }
 0x286   :  { %v586_v7 = vpop.f32.mrb[10].mxu0  ;;  %v1486_v5 = vld [vmem:[#allocation3 + $0x228] ss:$44 sps:$4 sm:$0xff]   ;;  %917 = vmatprep.subr.bf16.mxu0 %v1488_v4 }
 0x287   :  { %v588_v9 = vpop.f32.mrb[11].mxu0  ;;  %v587_v13 = vadd.f32 %v586_v7, %v205_v10  ;;  %918 = vmatpush1.bf16.msra.mxu0 %v1486_v5 }
 0x288   :  { %v589_v16 = vadd.f32 %v588_v9, %v209_v11 }
 0x28c   :  { %v592_v12 = vpop.f32.mrb[12].mxu0 }
 0x28d   :  { %v593_v14 = vadd.f32 %v592_v12, %v205_v10  ;;  %v594_v15 = vpop.f32.mrb[13].mxu0  ;;  %v1491_v10 = vld [vmem:[#allocation3 + $0x284] ss:$44 sps:$4 sm:$0xff]   ;;  %v1492_v12 = vld [vmem:[#allocation3 + $0x20] ss:$44 sps:$4 sm:$0xff]  }
 0x28e   :  { %v595_v18 = vadd.f32 %v594_v15, %v209_v11  ;;  %v596_v17 = vpop.f32.mrb[14].mxu0  ;;  %v1489_v11 = vld [vmem:[#allocation3 + $0x280] ss:$44 sps:$4 sm:$0xff]   ;;  %919 = vmatprep.subr.bf16.mxu0 %v1491_v10  ;;  %v1495_v15 = vld [vmem:[#allocation3 + $0x78] ss:$44 sps:$4 sm:$0xff]  }
 0x28f   :  { %v704_v19 = vpack.c.bf16 %v593_v14, %v587_v13  ;;  %v597_v20 = vpop.f32.mrb[15].mxu0  ;;  %920 = vmatpush1.bf16.msra.mxu0 %v1489_v11  ;;  %v1494_v13 = vld [vmem:[#allocation3 + $0x24] ss:$44 sps:$4 sm:$0xff]   ;;  %v1497_v14 = vld [vmem:[#allocation3 + $0x7c] ss:$44 sps:$4 sm:$0xff]  }
 0x290   :  { %v758_v21 = vpack.c.bf16 %v595_v18, %v589_v16  ;;  %1362 = vmatprep.subr.bf16.mxu0 %v1667_v34  ;;  %v1500_v16 = vld [vmem:[#allocation3 + $0xd4] ss:$44 sps:$4 sm:$0xff]   ;;  %v1498_v18 = vld [vmem:[#allocation3 + $0xd0] ss:$44 sps:$4 sm:$0xff]   ;;  %v1503_v17 = vld [vmem:[#allocation3 + $0x12c] ss:$44 sps:$4 sm:$0xff]  }
 0x291   :  { %v1504_v20 = vld [vmem:[#allocation3 + $0x180] ss:$44 sps:$4 sm:$0xff]  }
 0x344   :  { %v635_v22 = vpop.f32.mrb[8].mxu1 }
 0x345   :  { %v1342_v23 = vpop.f32.mrb[9].mxu1  ;;  %v642_v24 = vsel %vm641_vm2, %v635_v22, -inf }
 0x346   :  { %643 = vmax.xlane.f32.xlu0 %v642_v24  ;;  %v638_v25 = vpop.f32.mrb[10].mxu1 }
 0x347   :  { %v1343_v26 = vpop.f32.mrb[11].mxu1 }
 0x3d3   :  { %v644_v27 = vpop.xlane.xlu0 %643 }
 0x3d4   :  { %v645_v28 = vsub.f32 %v635_v22, %v644_v27 }
 0x3d6   :  { %v646_v29 = vmul.f32 1.442695, %v645_v28  ;;  %v1509_v28 = vld [vmem:[#allocation3 + $0x1dc] ss:$44 sps:$4 sm:$0xff]  }
 0x3d8   :  { %1530 = vpow2.f32 %v646_v29  ;;  %v1507_v29 = vld [vmem:[#allocation3 + $0x1d8] ss:$44 sps:$4 sm:$0xff]  }
 0x3e2   :  { %v1531_v30 = vpop.eup %1530 }
 0x3e3   :  { %v648_v31 = vsel %vm641_vm2, %v1531_v30, 0.0 }
 0x3e4   :  { %649 = vadd.xlane.f32.xlu1 %v648_v31  ;;  %v1510_v31 = vld [vmem:[#allocation3 + $0x230] ss:$44 sps:$4 sm:$0xff]  }
 0x471   :  { %v650_v32 = vpop.xlane.xlu1 %649 }
 0x472   :  { %1532 = vrcp.f32 %v650_v32  ;;  %v1513_v32 = vld [vmem:[#allocation3 + $0x288] ss:$44 sps:$4 sm:$0xff]  }
 0x47c   :  { %v1533_v35 = vpop.eup %1532 }
 0x47d   :  { %v652_v37 = vmul.f32 %v1533_v35, %v1531_v30  ;;  %v1512_v30 = vld [vmem:[#allocation3 + $0x234] ss:$44 sps:$4 sm:$0xff]  }
 0x47e   :  { %v1516_v35 = vld [vmem:[#allocation3 + $0x28] ss:$44 sps:$4 sm:$0xff]  }
 0x47f   :  { %v653_v40 = vpack.c.bf16 %v652_v37, %v652_v37  ;;  %v1517_v37 = vld [vmem:[#allocation3 + $0x80] ss:$44 sps:$4 sm:$0xff]  }
 0x481   :  { %1347 = vmatmul.mubr.msk.bf16.vlgmr.msra.gmra.mrb[12].mxu1 %vm655_vm3, %v653_v40  ;;  %v1519_v40 = vld [vmem:[#allocation3 + $0x130] ss:$44 sps:$4 sm:$0xff]  }
 0x482   :  { %1351 = vmatpush3.bf16.xpose.msra.mxu1 %v704_v19  ;;  %1352 = vmatprep.mubr.msk.bf16.mxu1 %vm1668_vm0, %v1667_v34  ;;  %v1506_v19 = vld [vmem:[#allocation3 + $0x184] ss:$44 sps:$4 sm:$0xff]  }
 0x483   :  { %1356 = vmatprep.subr.bf16.mxu1 %v1667_v34 }
 0x489   :  { %1353 = vmatmul.mubr.bf16.vlgmr.msra.gmra.mrb[16].mxu1 %v703_v42 }
 0x48a   :  { %1357 = vmatpush3.bf16.msra.mxu1 %v758_v21  ;;  %1358 = vmatprep.mubr.msk.bf16.mxu1 %vm1668_vm0, %v1667_v34 }
 0x48b   :  { %1058 = vmatprep.subr.bf16.mxu1 %v1494_v13 }
 0x554   :  { %v1811_v36 = vpop.f32.mrb[12].mxu1 }
 0x555   :  { %v1348_v43 = vpop.f32.mrb[13].mxu1 }
 0x556   :  { %v700_v38 = vpop.f32.mrb[14].mxu1 }
 0x557   :  { %v1349_v44 = vpop.f32.mrb[15].mxu1  ;;  %v950_v38 = vld [vmem:[#allocation2 + $0x8] sm:$0x1] }
 0x55c   :  { %v739_v45 = vpop.f32.mrb[16].mxu1 }
 0x55d   :  { %v1354_v47 = vpop.f32.mrb[17].mxu1  ;;  %v746_v48 = vsel %vm745_vm4, %v739_v45, -inf }
 0x55e   :  { %747 = vmax.xlane.f32.xlu0 %v746_v48  ;;  %v742_v49 = vpop.f32.mrb[18].mxu1  ;;  %v955_v47 = vld [vmem:[#allocation8 + $0x7] sm:$0x1] }
 0x55f   :  { %v1355_v50 = vpop.f32.mrb[19].mxu1 }
 0x5eb   :  { %v748_v51 = vpop.xlane.xlu0 %747 }
 0x5ec   :  { %v749_v52 = vsub.f32 %v739_v45, %v748_v51  ;;  %v948_v51 = vld [vmem:[#allocation8 + $0x6] sm:$0x1] }
 0x5ee   :  { %v750_v53 = vmul.f32 1.442695, %v749_v52 }
 0x5f0   :  { %1534 = vpow2.f32 %v750_v53 }
 0x5fa   :  { %v1535_v54 = vpop.eup %1534 }
 0x5fb   :  { %v752_v55 = vsel %vm745_vm4, %v1535_v54, 0.0 }
 0x5fc   :  { %753 = vadd.xlane.f32.xlu1 %v752_v55 }
 0x689   :  { %v754_v6 = vpop.xlane.xlu1 %753 }
 0x68a   :  { %1536 = vrcp.f32 %v754_v6  ;;  %v1123_v6 = vld [vmem:[#allocation8 + $0x9] sm:$0x1] }
 0x694   :  { %v1537_v7 = vpop.eup %1536 }
 0x695   :  { %v756_v8 = vmul.f32 %v1537_v7, %v1535_v54 }
 0x697   :  { %v757_v9 = vpack.c.bf16 %v756_v8, %v756_v8 }
 0x699   :  { %1359 = vmatmul.mubr.msk.bf16.vlgmr.msra.gmra.mrb[20].mxu1 %vm759_vm5, %v757_v9 }
 0x69a   :  { %1090 = vmatprep.mubr.bf16.mxu1 %v1666_v46  ;;  %1059 = vmatpush1.bf16.msra.mxu1 %v1492_v12  ;;  %v1501_v46 = vld [vmem:[#allocation3 + $0x128] ss:$44 sps:$4 sm:$0xff]  }
 0x69b   :  { %1060 = vmatprep.subr.bf16.mxu1 %v1497_v14 }
 0x69e   :  { %1061 = vmatpush1.bf16.msra.mxu1 %v1495_v15 }
 0x69f   :  { %1062 = vmatprep.subr.bf16.mxu1 %v1500_v16 }
 0x6a2   :  { %1063 = vmatpush1.bf16.msra.mxu1 %v1498_v18 }
 0x6a3   :  { %1064 = vmatprep.subr.bf16.mxu1 %v1503_v17 }
 0x6a6   :  { %1065 = vmatpush1.bf16.msra.mxu1 %v1501_v46 }
 0x6a7   :  { %1066 = vmatprep.subr.bf16.mxu1 %v1506_v19 }
 0x6aa   :  { %1067 = vmatpush1.bf16.msra.mxu1 %v1504_v20 }
 0x6ab   :  { %1068 = vmatprep.subr.bf16.mxu1 %v1509_v28 }
 0x6ae   :  { %1069 = vmatpush1.bf16.msra.mxu1 %v1507_v29 }
 0x6af   :  { %1070 = vmatprep.subr.bf16.mxu1 %v1512_v30 }
 0x6b2   :  { %1071 = vmatpush1.bf16.msra.mxu1 %v1510_v31 }
 0x6b3   :  { %1072 = vmatprep.subr.bf16.mxu1 %v1515_v33 }
 0x6b6   :  { %1073 = vmatpush1.bf16.msra.mxu1 %v1513_v32 }
 0x76c   :  { %v797_v21 = vpop.f32.mrb[20].mxu1 }
 0x76d   :  { %v804_v22 = vrot.slane %v797_v21, 7  ;;  %v1360_v23 = vpop.f32.mrb[21].mxu1 }
 0x76e   :  { %v800_v24 = vpop.f32.mrb[22].mxu1 }
 0x76f   :  { %v807_v25 = vsel %vm806_vm6, %v1811_v36, %v804_v22  ;;  %v1361_v26 = vpop.f32.mrb[23].mxu1  ;;  %v946_v36 = vld [vmem:[#allocation2] sm:$0x1] }
 0x770   :  { %v808_v27 = vpack.c.bf16 %v807_v25, %v807_v25 }
 0x772   :  { %938 = vmatmul.mubr.bf16.vlgmr.msra.gmra.mrb[16].mxu0 %v808_v27 }
 0x773   :  { %1378 = vmatprep.mubr.msk.bf16.mxu0 %vm1668_vm0, %v1667_v34  ;;  %1363 = vmatpush3.bf16.msra.mxu0 %v1516_v35 }
 0x774   :  { %1364 = vmatprep.subr.bf16.mxu0 %v1667_v34 }
 0x777   :  { %1365 = vmatpush3.bf16.msra.mxu0 %v1517_v37 }
 0x778   :  { %1366 = vmatprep.subr.bf16.mxu0 %v1667_v34 }
 0x77b   :  { %1367 = vmatpush3.bf16.msra.mxu0 %v1518_v39 }
 0x77c   :  { %1368 = vmatprep.subr.bf16.mxu0 %v1667_v34 }
 0x77f   :  { %1369 = vmatpush3.bf16.msra.mxu0 %v1519_v40 }
 0x780   :  { %1370 = vmatprep.subr.bf16.mxu0 %v1667_v34 }
 0x783   :  { %1371 = vmatpush3.bf16.msra.mxu0 %v1520_v41 }
 0x784   :  { %1372 = vmatprep.subr.bf16.mxu0 %v1667_v34 }
 0x787   :  { %1373 = vmatpush3.bf16.msra.mxu0 %v1521_v57 }
 0x788   :  { %1374 = vmatprep.subr.bf16.mxu0 %v1667_v34 }
 0x78b   :  { %1375 = vmatpush3.bf16.msra.mxu0 %v1522_v58 }
 0x78c   :  { %1376 = vmatprep.subr.bf16.mxu0 %v1667_v34 }
 0x78f   :  { %1377 = vmatpush3.bf16.msra.mxu0 %v1523_v59 }
 0x845   :  { %v939_v42 = vpop.f32.mrb[16].mxu0 }
 0x846   :  { %v941_v43 = vpop.f32.mrb[17].mxu0  ;;  %v947_v49 = vadd.f32 %v946_v36, %v939_v42 }
 0x847   :  { %v952_v44 = vrot.slane %v941_v43, 1  ;;  %v943_v45 = vpop.f32.mrb[18].mxu0 }
 0x848   :  { %v944_v48 = vpop.f32.mrb[19].mxu0  ;;  %v949_v53 = vadd.f32 %v948_v51, %v947_v49 }
 0x849   :  { %v954_v50 = vadd.f32 %v952_v44, %v950_v38 }
 0x84b   :  { %v956_v52 = vadd.f32 %v955_v47, %v954_v50 }
 0x84d   :  { %v958_v54 = vrot.slane %v956_v52, 7 }
 0x84f   :  { %v960_v55 = vsel %vm806_vm6, %v949_v53, %v958_v54 }
 0x850   :  { %v961_v56 = vpack.c.bf16 %v960_v55, %v960_v55 }
 0x852   :  { %1091 = vmatmul.mubr.bf16.vlgmr.msra.gmra.mrb[24].mxu1 %v961_v56 }
 0x925   :  { %v1092_v60 = vpop.f32.mrb[24].mxu1 }
 0x926   :  { %v1094_v61 = vpop.f32.mrb[25].mxu1 }
 0x927   :  { %v1100_v62 = vrot.slane %v1094_v61, 1  ;;  %v1096_v63 = vpop.f32.mrb[26].mxu1 }
 0x928   :  { %v1097_v1 = vpop.f32.mrb[27].mxu1 }
 0x929   :  { %v1102_v2 = vadd.f32 %v1100_v62, %v1092_v60 }
 0x92b   :  { %v1104_v3 = vadd.f32 %v1103_v0, %v1102_v2 }
 0x92d   :  { %v1105_v4 = vmax.f32 %v1104_v3, 0.0 }
 0x92f   :  { %v1106_v5 = vpack.c.bf16 %v1105_v4, %v1105_v4 }
 0x931   :  { %1379 = vmatmul.mubr.bf16.vlgmr.msra.gmra.mrb[20].mxu0 %v1106_v5 }
 0xa04   :  { %v1206_v7 = vpop.f32.mrb[20].mxu0 }
 0xa05   :  { %v1207_v8 = vadd.f32 %v1206_v7, %v1123_v6  ;;  %v1380_v9 = vpop.f32.mrb[21].mxu0 }
 0xa06   :  { %v1209_v34 = vpop.f32.mrb[22].mxu0 }
 0xa07   :  { %v1212_v10 = vmax.f32 %v1207_v8, 0.0  ;;  %v1381_v11 = vpop.f32.mrb[23].mxu0 }
 0xa09   :  { %1213 = vst [vmem:[#allocation11] sm:$0x1] %v1212_v10 }
 0xa0a   :  { %1637 = shalt.err (!%p1634_p8)
}
 0xa0b   :  { %s1638_s24 = scalar_lea.hbm %s1844_s5, 16 }
 0xa0c   :  { %p1639_p9 = scmp.ne.s32.totalorder %s1844_s5, %s1638_s24  ;;  %p1642_p10 = scmp.lt.u32.totalorder %s1638_s24, %s1844_s5 }
 0xa0e   :  { %p1644_p11 = pnand %p1642_p10, %p1639_p9 }
 0xa10   :  { %1647 = shalt.err (!%p1644_p11)
}
 0xa11   :  { %1223 = dma.vmem_to_hbm [thread:$0]  %s1221_s4, 16, %s1844_s5, [#allocation5]  }
 0xa12   :  { %1654 = dma.done.wait [#allocation5], 16  }
 0xa13   :  { %1655 = vsyncadd [#allocation5], 4294967280 }
 0xa14   :  { %1227 = vsyncpa [#allocation4], 1 }
 0xa15   :  { %1228 = vsyncpa [#allocation7], 1 }
 0xa16   :  { %1229 = vsyncpa [#allocation10], 1 }
 0xa17   :  { %1230 = vsyncpa [#allocation5], 1 }

</bundles_post_ra>
